<compile_context>
chip_gen: v7x
topology: tpu7x:2x2x1
jax: 0.10.0
libtpu: 0.0.40
codegen_flags: <defaults>
</compile_context>

<pallas_src>
import math

import numpy as np
import jax
import jax.numpy as jnp
from jax.experimental import pallas as pl
from jax.experimental.pallas import tpu as pltpu


# ----------------------------------------------------------------------------
# Pallas kernel: |x|^2 distortion + fused per-channel linear leakage
# ----------------------------------------------------------------------------
def nlin_core_kernel(x_ref, w_ref, o_ref):
    x = x_ref[...].astype(jnp.float32)            # (TM, L) interleaved r/i
    sq = x * x

    # Pair-sum amp[., 2c] == amp[., 2c+1] == r_c^2 + i_c^2 without an MXU pass:
    # swap even/odd lanes via two XLU rotates + a parity select (VPU).
    L = sq.shape[-1]
    nxt = pltpu.roll(sq, L - 1, axis=1)           # nxt[k] = sq[k + 1]
    prv = pltpu.roll(sq, 1, axis=1)               # prv[k] = sq[k - 1]
    lane = jax.lax.broadcasted_iota(jnp.int32, sq.shape, 1)
    swapped = jnp.where((lane % 2) == 0, nxt, prv)
    amp = sq + swapped

    f = amp * x                                   # distorted, still interleaved

    # Single fused leakage matmul: bf16 (or f32) operands, f32 accumulation.
    o_ref[...] = jnp.dot(
        f.astype(w_ref.dtype), w_ref[...], preferred_element_type=jnp.float32
    ).astype(o_ref.dtype)


# ----------------------------------------------------------------------------
# Fuse the C masked Linear layers into one (2C, 2C) interleaved slab
# ----------------------------------------------------------------------------
def build_fused_weight(per_channel_w):
    """per_channel_w: (C, 2, 2*(C-1)) torch-Linear weights -> W (2C, 2C).

    Row 2j / 2j+1 multiply the distorted REAL / IMAG of channel j; column
    2c+p is the (real p=0 / imag p=1) output of channel c.  Own-channel rows
    (j == c) are zero (the leakage mask).
    """
    w = np.asarray(per_channel_w, dtype=np.float32)
    C = w.shape[0]
    W = np.zeros((2 * C, 2 * C), dtype=np.float32)
    for c in range(C):
        others = [j for j in range(C) if j != c]
        for idx, j in enumerate(others):
            for p in range(2):
                W[2 * j, 2 * c + p] = w[c, p, idx]                # real input
                W[2 * j + 1, 2 * c + p] = w[c, p, (C - 1) + idx]  # imag input
    return jnp.asarray(W)


def _vmem_bytes(tm, L, io_itemsize, w_itemsize):
    io = 2 * 2 * tm * L * io_itemsize        # x + out tiles, double-buffered
    tmp = 4 * tm * L * 4                     # f32 temporaries (sq/amp/f/cast)
    w = 2 * L * L * w_itemsize               # resident fused weight
    return io + tmp + w


# ----------------------------------------------------------------------------
# Wrapper
# ----------------------------------------------------------------------------
def nlin_core_forward(x, w_fused, *, block_rows=1024,
                      matmul_dtype=jnp.bfloat16, core_parallel=False,
                      vmem_budget_bytes=40 << 20):
    """x: (b, s, C, 2) -> (b, s, C, 2).  w_fused: (2C, 2C) from build_fused_weight."""
    b, s, C, two = x.shape
    assert two == 2
    N = b * s
    twoC = 2 * C
    assert w_fused.shape == (twoC, twoC)

    # Lane-dense grouping: view G consecutive rows as one super-row so the
    # last dim L = G*2C is a multiple of 128 (free row-major view).
    if twoC % 128 == 0:
        G = 1
    else:
        g0 = 128 // math.gcd(128, twoC)
        G = g0 if (N % g0 == 0) else 1
    L = G * twoC
    rows = N // G
    x_flat = x.reshape(rows, L)                       # free view

    w = w_fused.astype(jnp.float32)
    if G > 1:
        w = jnp.kron(jnp.eye(G, dtype=jnp.float32), w)  # block-diagonal
    w = w.astype(matmul_dtype)

    # Tile the row axis; keep the estimate under an explicit VMEM budget so
    # large configs never OOM v7x (64 MiB physical / 32 MiB default scoped).
    io_sz = x.dtype.itemsize
    w_sz = jnp.dtype(matmul_dtype).itemsize
    tm = min(rows, block_rows)
    if tm < rows:
        tm = max(8, (tm // 8) * 8)
    while _vmem_bytes(tm, L, io_sz, w_sz) > vmem_budget_bytes and tm > 8:
        tm = max(8, (tm // 2 // 8) * 8)
    est = _vmem_bytes(tm, L, io_sz, w_sz)
    vmem_limit = min(est + (8 << 20), 56 << 20) if est > (24 << 20) else None

    # core_parallel=True -> shard row tiles across v7x's two TensorCores.
    sem = pltpu.CORE_PARALLEL if core_parallel else pltpu.PARALLEL

    out = pl.pallas_call(
        nlin_core_kernel,
        out_shape=jax.ShapeDtypeStruct((rows, L), x.dtype),
        grid=(pl.cdiv(rows, tm),),
        in_specs=[
            # x tile, double-buffered.  If a profile shows exposed DMA at very
            # large C, add pipeline_mode=pl.Buffered(3) here.
            pl.BlockSpec((tm, L), lambda i: (i, 0)),
            pl.BlockSpec((L, L), lambda i: (0, 0)),       # fused W, resident
        ],
        out_specs=pl.BlockSpec((tm, L), lambda i: (i, 0)),
        compiler_params=pltpu.CompilerParams(
            dimension_semantics=(sem,), vmem_limit_bytes=vmem_limit),
    )(x_flat, w)

    return out.reshape(b, s, C, 2)                    # free view back


# ----------------------------------------------------------------------------
# Pure-NumPy reference mirroring the PyTorch double loop
# ----------------------------------------------------------------------------
def nlin_core_ref(x, per_channel_w):
    x = np.asarray(x, dtype=np.float64)
    w = np.asarray(per_channel_w, dtype=np.float64)
    b, s, C, _ = x.shape
    xr, xi = x[..., 0], x[..., 1]
    amp = xr ** 2 + xi ** 2
    fr, fi = amp * xr, amp * xi
    out = np.empty_like(x)
    for sid in range(s):
        for c in range(C):
            mask = [j for j in range(C) if j != c]
            tf = np.concatenate([fr[:, sid][:, mask], fi[:, sid][:, mask]],
                                axis=-1)
            co = tf @ w[c].T                         # (b, 2)
            out[:, sid, c, 0] = co[:, 0]
            out[:, sid, c, 1] = co[:, 1]
    return out


# ----------------------------------------------------------------------------
if __name__ == "__main__":
    batch = 2
    out_window = 128       # seq_len
    n_channels = 4
    output_size = 2        # complex real/imag pair

    key = jax.random.PRNGKey(0)
    k_x, k_w = jax.random.split(key)

    # Input to the nlin core (output of TxaFilterEnsemble): (b, s, c, 2)
    x = jax.random.normal(
        k_x, (batch, out_window, n_channels, 2), dtype=jnp.float32)

    # Deterministic per-channel Linear weights: (C, 2, 2*(C-1))
    fan_in = output_size * (n_channels - 1)
    bound = 1.0 / np.sqrt(fan_in)
    per_channel_w = jax.random.uniform(
        k_w, (n_channels, output_size, fan_in),
        minval=-bound, maxval=bound, dtype=jnp.float32)

    w_fused = build_fused_weight(per_channel_w)       # (2C, 2C) f32

    # block_rows=8 so the small test exercises the tiled path (grid=(2,));
    # production default is 1024 super-rows per tile.
    out = nlin_core_forward(x, w_fused, block_rows=8)
    out = jax.block_until_ready(out)

    ref = nlin_core_ref(x, per_channel_w)
    scale = float(np.abs(ref).max())
    # bf16 MXU operands (f32 accumulation) -> loosened tolerance vs f64 ref.
    np.testing.assert_allclose(np.asarray(out, np.float64), ref,
                               rtol=2e-2, atol=2e-2 * scale)

    print("KERNEL_OK")
</pallas_src>

<mosaic_0001>
module attributes {stable_mosaic.version = 11 : i64} {
  func.func @nlin_core_kernel(%arg0: i32, %arg1: memref<8x128xf32, #tpu.memory_space<vmem>>, %arg2: memref<128x128xbf16, #tpu.memory_space<vmem>>, %arg3: memref<8x128xf32, #tpu.memory_space<vmem>>) attributes {dimension_semantics = [#tpu.dimension_semantics<parallel>], iteration_bounds = array<i64: 2>, scalar_prefetch = 0 : i64, scratch_operands = 0 : i64, tpu.core_type = #tpu.core_type<tc>, window_params = [{transform_indices = @transform_0, window_bounds = array<i64: 8, 128>}, {pipeline_mode = #tpu.pipeline_mode<synchronous>, transform_indices = @transform_1, window_bounds = array<i64: 128, 128>}, {transform_indices = @transform_2, window_bounds = array<i64: 8, 128>}]} {
    %c0 = arith.constant 0 : index
    %c0_0 = arith.constant 0 : index
    %0 = vector.load %arg1[%c0, %c0_0] : memref<8x128xf32, #tpu.memory_space<vmem>>, vector<8x128xf32>
    %1 = arith.mulf %0, %0 : vector<8x128xf32>
    %c127_i32 = arith.constant 127 : i32
    %2 = tpu.dynamic_rotate %1 by %c127_i32 dim 1 : vector<8x128xf32>, i32 -> vector<8x128xf32>
    %c1_i32 = arith.constant 1 : i32
    %3 = tpu.dynamic_rotate %1 by %c1_i32 dim 1 : vector<8x128xf32>, i32 -> vector<8x128xf32>
    %4 = tpu.iota {dimensions = array<i32: 1>} : vector<8x128xi32>
    %c2_i32 = arith.constant 2 : i32
    %c0_i32 = arith.constant 0 : i32
    %5 = arith.cmpi eq, %c2_i32, %c0_i32 : i32
    %c1_i32_1 = arith.constant 1 : i32
    %6 = arith.select %5, %c1_i32_1, %c2_i32 : i32
    %7 = vector.broadcast %6 : i32 to vector<8x128xi32>
    %8 = arith.remsi %4, %7 : vector<8x128xi32>
    %c0_i32_2 = arith.constant 0 : i32
    %9 = vector.broadcast %c0_i32_2 : i32 to vector<8x128xi32>
    %10 = arith.cmpi ne, %8, %9 : vector<8x128xi32>
    %c0_i32_3 = arith.constant 0 : i32
    %11 = vector.broadcast %c0_i32_3 : i32 to vector<8x128xi32>
    %12 = arith.cmpi slt, %8, %11 : vector<8x128xi32>
    %c0_i32_4 = arith.constant 0 : i32
    %13 = arith.cmpi slt, %6, %c0_i32_4 : i32
    %14 = vector.broadcast %13 : i1 to vector<8x128xi1>
    %15 = vector.broadcast %14 : vector<8x128xi1> to vector<8x128xi1>
    %16 = arith.xori %12, %15 : vector<8x128xi1>
    %17 = arith.andi %16, %10 : vector<8x128xi1>
    %18 = vector.broadcast %6 : i32 to vector<8x128xi32>
    %19 = arith.addi %8, %18 : vector<8x128xi32>
    %20 = arith.select %17, %19, %8 : vector<8x128xi1>, vector<8x128xi32>
    %c0_i32_5 = arith.constant 0 : i32
    %21 = vector.broadcast %c0_i32_5 : i32 to vector<8x128xi32>
    %22 = arith.cmpi eq, %20, %21 : vector<8x128xi32>
    %23 = arith.select %22, %2, %3 : vector<8x128xi1>, vector<8x128xf32>
    %24 = arith.addf %1, %23 : vector<8x128xf32>
    %25 = arith.mulf %24, %0 : vector<8x128xf32>
    %26 = arith.truncf %25 : vector<8x128xf32> to vector<8x128xbf16>
    %c0_6 = arith.constant 0 : index
    %c0_7 = arith.constant 0 : index
    %27 = vector.load %arg2[%c0_6, %c0_7] : memref<128x128xbf16, #tpu.memory_space<vmem>>, vector<128x128xbf16>
    %cst = arith.constant dense<0.000000e+00> : vector<8x128xf32>
    %28 = tpu.matmul %26, %27, %cst {dimension_numbers = #tpu.dot_dimension_numbers<[1], [0], [0], [1], [0, 0, 1, 1], [], []>} : vector<8x128xbf16>, vector<128x128xbf16>, vector<8x128xf32> -> vector<8x128xf32>
    %c0_8 = arith.constant 0 : index
    %c0_9 = arith.constant 0 : index
    %29 = vector.load %arg3[%c0_8, %c0_9] : memref<8x128xf32, #tpu.memory_space<vmem>>, vector<8x128xf32>
    tpu.vector_store %arg3[%c0_8, %c0_9], %28 {strides = array<i32>} : memref<8x128xf32, #tpu.memory_space<vmem>>, vector<8x128xf32>,
    return
  }
  func.func @transform_0(%arg0: i32) -> (i32, i32) {
    %c0_i32 = arith.constant 0 : i32
    %c0_i32_0 = arith.constant 0 : i32
    return %arg0, %c0_i32 : i32, i32
  }
  func.func @transform_1(%arg0: i32) -> (i32, i32) {
    %c0_i32 = arith.constant 0 : i32
    %c0_i32_0 = arith.constant 0 : i32
    %c0_i32_1 = arith.constant 0 : i32
    return %c0_i32, %c0_i32_0 : i32, i32
  }
  func.func @transform_2(%arg0: i32) -> (i32, i32) {
    %c0_i32 = arith.constant 0 : i32
    %c0_i32_0 = arith.constant 0 : i32
    return %arg0, %c0_i32 : i32, i32
  }
}

</mosaic_0001>

<bundles_post_ra>
// kernel: tpu_custom_call.1
= control target key start
LH: loop header
LB: loop body
LE: loop exit
PB: predicated region body
PF: predicated region fallthrough
CT: control target
= control target key end

     0   :  { %7 = vsyncpa [#allocation3], 0  ;;  %s875_s0 = inlined_call_operand.hbm [shape: f32[16,128], index: 0, kind: input, shape index: {}]   ;;  %s876_s1 = inlined_call_operand.hbm [shape: bf16[128,128], index: 1, kind: input, shape index: {}]   ;;  %s877_s2 = inlined_call_operand.hbm [shape: f32[16,128], index: 2, kind: output, shape index: {}]  }
   0x1   :  { %9 = vsyncpa [#allocation3 + $0x1], 0 }
   0x2   :  { %10 = vsyncpa [#allocation6], 0 }
   0x3   :  { %11 = vsyncpa [#allocation4], 0 }
   0x4   :  { %13 = vsyncpa [#allocation4 + $0x1], 0  ;;  %s675_s9 = smov 0   ;;  %s677_s10 = smov 0  }
   0x5   :  { %s679_s11 = smov 0   ;;  %s681_s12 = smov 0  }
   0x6 LB: > { %s696_s13 = sadd.s32 4294967295, %s649_s12   ;;  %s399_s14 = sadd.s32 4294967294, %s649_s12   ;;  %s649_s12 = sphi %s681_s12, %s897_s12   ;;  %s645_s11 = sphi %s679_s11, %s896_s11   ;;  %s641_s10 = sphi %s677_s10, %s895_s10   ;;  %s637_s9 = sphi %s675_s9, %s894_s9  }
   0x7   : > { %p39_p0 = scmp.ne.s32.totalorder %s641_s10, %s637_s9  ;;  %p878_p1 = scmp.eq.s32.totalorder %s696_s13, 0 }
   0x8   : > { %p90_p3 = scmp.eq.s32.totalorder %s399_s14, 1  ;;  %p400_p5 = scmp.ge.s32.totalorder %s649_s12, 1 }
   0x9   : > { %p705_p4 = por %p878_p1, %p39_p0  ;;  %p97_p7 = scmp.lt.s32.totalorder %s649_s12, 3 }
   0xa   : > { %p710_p6 = por %p90_p3, %p39_p0  ;;  %s651_s18 = smov [#allocation5]  }
   0xb   : > { %s881_s15 = scalar_select %p705_p4, 1, 0 }
   0xc   : > { %s882_s16 = scalar_select %p710_p6, 1, 0 }
   0xd   : > { %p715_p8 = pnand %p400_p5, %p97_p7  ;;  %s109_s19 = sshll.u32 %s651_s18, 4  ;;  %s719_s19 = int_to_ptr.vmem [resolvable:$true] %s109_s19 }
   0xe   : > { %s731_s21 = sadd.s32 1, %s649_s12   ;;  %s26_s22 = sadd.s32 1, %s645_s11 }
   0xf   : > { %s883_s17 = scalar_select %p715_p8, 1, 0 }
  0x10   : > { %p458_p9 = pneg %p715_p8  ;;  %s23_s23 = ssub.s32 %s649_s12, %s731_s21 }
  0x11   : > { %s521_s26 = scalar_lea.hbm %s876_s1, 1024 }
  0x12   : > { %p726_p11 = pnand %p458_p9, %p878_p1  ;;  %p522_p12 = scmp.ne.s32.totalorder %s876_s1, %s521_s26 }
  0x13   : > { %p528_p5 = scmp.lt.u32.totalorder %s521_s26, %s876_s1 }
  0x14   : > { %p523_p13 = pneg %p726_p11 }
  0x16   : > { %p524_p0 = pnand %p523_p13, %p522_p12 }
  0x18   : > { %p525_p3 = pneg %p524_p0 }
  0x1a   : > { %p530_p7 = pnand %p528_p5, %p525_p3 }
  0x1c   : > { %533 = shalt.err (!%p530_p7)
}
  0x1d   : > { %s534_s3 = scalar_lea.vmem %s719_s19, 1024  ;;  %p542_p2 = scmp.lt.s32.totalorder %s719_s19, %s719_s19 }
  0x1e   : > { %p535_p9 = scmp.ne.s32.totalorder %s719_s19, %s534_s3  ;;  %p543_p6 = scmp.lt.s32.totalorder %s534_s3, %s534_s3 }
  0x20   : > { %p537_p10 = pnand %p535_p9, %p523_p13  ;;  %p544_p4 = por %p543_p6, %p542_p2 }
  0x22   : > { %p538_p1 = pneg %p537_p10 }
  0x24   : > { %p545_p8 = pnand %p544_p4, %p538_p1 }
  0x26   : > { %548 = shalt.err (!%p545_p8)
}
  0x27   : > { %s652_s4 = smov 64   ;;  %s653_s5 = smov 4  }
  0x28   : > { %461 = dma.hbm_to_vmem [thread:$0]  (!%p726_p11), %s876_s1, 1024, %s719_s19, [#allocation6], %s652_s4, %s652_s4, %s653_s5  }
  0x29   : > { %p24_p2 = scmp.eq.s32.totalorder %s23_s23, 0  ;;  %p33_p1 = scmp.ne.s32.totalorder %s645_s11, %s641_s10 }
  0x2a   : > { %p34_p4 = scmp.eq.s32.totalorder %s649_s12, 0  ;;  %p471_p6 = scmp.lt.s32.totalorder %s649_s12, 2 }
  0x2b   : > { %s762_s8 = scalar_select %p24_p2, %s645_s11, %s26_s22  }
  0x2c   : > { %p35_p8 = por %p34_p4, %p33_p1  ;;  %p885_p10 = scmp.eq.s32.totalorder %s696_s13, 1 }
  0x2d   : > { %s123_s18 = sand.u32 1, %s645_s11   ;;  %s404_s24 = sshll.u32 %s649_s12, 7 }
  0x2e   : > { %p766_p12 = por %p885_p10, %p33_p1  ;;  %s403_s25 = sshll.u32 %s123_s18, 3 }
  0x2f   : > { %s775_s27 = scalar_lea.hbm %s875_s0, %s404_s24  ;;  %s127_s19 = scalar_lea.vmem [#allocation2], %s403_s25 }
  0x30   : > { %s134_s22 = sshll.u32 %s127_s19, 4  ;;  %p777_p11 = pnand %p471_p6, %p35_p8  ;;  %s781_s22 = int_to_ptr.vmem [resolvable:$true] %s134_s22 }
  0x31   : > { %s124_s28 = scalar_lea.sflag [#allocation3], %s123_s18  ;;  %s549_s29 = scalar_lea.hbm %s775_s27, 128 }
  0x32   : > { %p550_p13 = scmp.ne.s32.totalorder %s775_s27, %s549_s29  ;;  %p551_p0 = pneg %p777_p11 }
  0x33   : > { %s554_s4 = scalar_lea.hbm %s875_s0, 256  ;;  %p555_p7 = scmp.lt.u32.totalorder %s775_s27, %s875_s0 }
  0x34   : > { %p552_p3 = pnand %p551_p0, %p550_p13  ;;  %p556_p9 = scmp.lt.u32.totalorder %s554_s4, %s549_s29 }
  0x35   : > { %p558_p1 = scmp.lt.u32.totalorder %s549_s29, %s775_s27 }
  0x36   : > { %p553_p5 = pneg %p552_p3  ;;  %p557_p2 = por %p556_p9, %p555_p7 }
  0x38   : > { %p559_p4 = por %p558_p1, %p557_p2 }
  0x3a   : > { %p560_p6 = pnand %p559_p4, %p553_p5 }
  0x3c   : > { %563 = shalt.err (!%p560_p6)
}
  0x3d   : > { %s564_s7 = scalar_lea.vmem %s781_s22, 128  ;;  %s654_s18 = smov [#allocation2]  }
  0x3e   : > { %p565_p8 = scmp.ne.s32.totalorder %s781_s22, %s564_s7  ;;  %s569_s24 = sshll.u32 %s654_s18, 4  ;;  %s570_s24 = int_to_ptr.vmem [resolvable:$false] %s569_s24 }
  0x3f   : > { %s571_s25 = scalar_lea.vmem %s570_s24, 256  ;;  %p572_p3 = scmp.lt.s32.totalorder %s781_s22, %s570_s24 }
  0x40   : > { %p567_p10 = pnand %p565_p8, %p551_p0  ;;  %p573_p7 = scmp.lt.s32.totalorder %s571_s25, %s564_s7 }
  0x42   : > { %p568_p13 = pneg %p567_p10  ;;  %p574_p9 = por %p573_p7, %p572_p3 }
  0x44   : > { %p575_p2 = pnand %p574_p9, %p568_p13 }
  0x46   : > { %578 = shalt.err (!%p575_p2)
}
  0x47   : > { %465 = dma.hbm_to_vmem [thread:$0]  (!%p777_p11), %s775_s27, 128, %s781_s22, %s124_s28  }
  0x48   : > { %p888_p5 = scmp.ne.s32.totalorder %s883_s17, 0 }
  0x49   : > { %s811_s20 = sand.u32 (!%p888_p5), 1, %s641_s10   ;;  %p889_p0 = scmp.ne.s32.totalorder (!%p888_p5), %s881_s15, 0 }
  0x4a   : > { %143 = sbr.rel (%p888_p5) target bundleno = 441 (0x1b9), region = 28  ;;  %s406_s26 = sshll.u32 (!%p888_p5), %s811_s20, 3 }
  0x4b   : > { %s146_s19 = scalar_lea.sflag (!%p888_p5), [#allocation3], %s811_s20  ;;  %s149_s29 = scalar_lea.vmem (!%p888_p5), [#allocation2], %s406_s26 }
  0x51   : > { %624 = dma.done.wait (%p889_p0), %s146_s19, 128  }
  0x52   : > { %626 = vsyncadd (%p889_p0), %s146_s19, 4294967168  ;;  %p890_p11 = scmp.eq.s32.totalorder %s696_s13, 0 }
  0x54   : > { %628 = dma.done.wait (%p890_p11), [#allocation6], 1024   ;;  %p891_p1 = pmov %p890_p11 }
  0x55   : > { %v655_v0 = vmov 0.0   ;;  %vm656_vm0 = vmmov 0   ;;  %v175_v1 = vld [vmem:[%s149_s29] sm:$0xff]  ;;  %v513_v3 = vld [vmem:[#allocation5] sm:$0xff]   ;;  %s657_s17 = smov 127   ;;  %v514_v4 = vld [vmem:[#allocation5 + $0x8] sm:$0xff]   ;;  %v181_v11 = vlaneseq }
  0x56   : > { %630 = vsyncadd (%p891_p1), [#allocation6], 4294966272  ;;  %430 = vmatprep.subr.bf16.mxu0 %v655_v0  ;;  %446 = vmatprep.mubr.msk.bf16.mxu0 %vm656_vm0, %v655_v0  ;;  %v176_v2 = vmul.f32 %v175_v1, %v175_v1  ;;  %s658_s15 = smov 1   ;;  %v515_v5 = vld [vmem:[#allocation5 + $0x10] sm:$0xff]   ;;  %v516_v6 = vld [vmem:[#allocation5 + $0x18] sm:$0xff]   ;;  %s173_s27 = scalar_lea.vmem [#allocation7], %s406_s26 }
  0x57   : > { %431 = vmatpush3.bf16.msra.mxu0 %v513_v3  ;;  %v517_v7 = vld [vmem:[#allocation5 + $0x20] sm:$0xff]   ;;  %v518_v8 = vld [vmem:[#allocation5 + $0x28] sm:$0xff]   ;;  %v519_v9 = vld [vmem:[#allocation5 + $0x30] sm:$0xff]   ;;  %v182_v12 = vand.u32 127, %v181_v11  ;;  %s319_s22 = sshll.u32 %s173_s27, 4  ;;  %s418_s23 = sshll.u32 %s696_s13, 7  ;;  %s828_s22 = int_to_ptr.vmem [resolvable:$true] %s319_s22 }
  0x58   : > { %177 = vrot.lane.b32.xlu0 %v176_v2, %s657_s17  ;;  %432 = vmatprep.subr.bf16.mxu0 %v655_v0  ;;  %v520_v10 = vld [vmem:[#allocation5 + $0x38] sm:$0xff]   ;;  %s833_s3 = scalar_lea.hbm %s877_s2, %s418_s23  ;;  %s306_s4 = scalar_lea.sflag [#allocation4], %s811_s20 }
  0x59   : > { %v187_v13 = vand.u32 1, %v182_v12  ;;  %s579_s5 = scalar_lea.vmem %s828_s22, 128  ;;  %s659_s13 = smov [#allocation7]  }
  0x5a   : > { %p580_p4 = scmp.ne.s32.totalorder %s828_s22, %s579_s5  ;;  %s583_s6 = sshll.u32 %s659_s13, 4  ;;  %s584_s6 = int_to_ptr.vmem [resolvable:$false] %s583_s6 }
  0x5b   : > { %433 = vmatpush3.bf16.msra.mxu0 %v514_v4  ;;  %vm195_vm1 = vcmp.eq.s32.totalorder %v187_v13, 0  ;;  %s585_s7 = scalar_lea.vmem %s584_s6, 256  ;;  %p586_p10 = scmp.lt.s32.totalorder %s828_s22, %s584_s6 }
  0x5c   : > { %179 = vrot.lane.b32.xlu0 %v176_v2, %s658_s15  ;;  %434 = vmatprep.subr.bf16.mxu0 %v655_v0  ;;  %p581_p6 = pnand %p580_p4, %p766_p12  ;;  %p587_p13 = scmp.lt.s32.totalorder %s585_s7, %s579_s5 }
  0x5e   : > { %p582_p8 = pneg %p581_p6  ;;  %p588_p3 = por %p587_p13, %p586_p10 }
  0x5f   : > { %435 = vmatpush3.bf16.msra.mxu0 %v515_v5 }
  0x60   : > { %436 = vmatprep.subr.bf16.mxu0 %v655_v0  ;;  %p589_p7 = pnand %p588_p3, %p582_p8 }
  0x63   : > { %437 = vmatpush3.bf16.msra.mxu0 %v516_v6 }
  0x64   : > { %438 = vmatprep.subr.bf16.mxu0 %v655_v0 }
  0x67   : > { %439 = vmatpush3.bf16.msra.mxu0 %v517_v7 }
  0x68   : > { %440 = vmatprep.subr.bf16.mxu0 %v655_v0 }
  0x6b   : > { %441 = vmatpush3.bf16.msra.mxu0 %v518_v8 }
  0x6c   : > { %442 = vmatprep.subr.bf16.mxu0 %v655_v0 }
  0x6f   : > { %443 = vmatpush3.bf16.msra.mxu0 %v519_v9 }
  0x70   : > { %444 = vmatprep.subr.bf16.mxu0 %v655_v0 }
  0x73   : > { %445 = vmatpush3.bf16.msra.mxu0 %v520_v10 }
  0xca   : > { %v178_v14 = vpop.permute.xlu0 %177 }
  0xce   : > { %v180_v15 = vpop.permute.xlu0 %179 }
  0xcf   : > { %v196_v16 = vsel %vm195_vm1, %v178_v14, %v180_v15 }
  0xd0   : > { %v197_v17 = vadd.f32 %v196_v16, %v176_v2 }
  0xd2   : > { %v198_v18 = vmul.f32 %v197_v17, %v175_v1 }
  0xd4   : > { %v199_v19 = vpack.c.bf16 %v198_v18, %v198_v18 }
  0xd6   : > { %447 = vmatmul.mubr.bf16.vlgmr.msra.gmra.mrb[0].mxu0 %v199_v19 }
 0x1a9   : > { %v298_v20 = vpop.f32.mrb[0].mxu0 }
 0x1aa   : > { %304 = vst [vmem:[%s173_s27] sm:$0xff] %v298_v20  ;;  %v448_v21 = vpop.f32.mrb[1].mxu0 }
 0x1ab   : > { %v301_v22 = vpop.f32.mrb[2].mxu0 }
 0x1ac   : > { %592 = shalt.err (!%p589_p7)
}
 0x1ad   : > { %s593_s18 = scalar_lea.hbm %s833_s3, 128  ;;  %s597_s20 = scalar_lea.hbm %s877_s2, 256 }
 0x1ae   : > { %p594_p9 = scmp.ne.s32.totalorder %s833_s3, %s593_s18  ;;  %p598_p0 = scmp.lt.u32.totalorder %s833_s3, %s877_s2 }
 0x1af   : > { %p599_p11 = scmp.lt.u32.totalorder %s597_s20, %s593_s18  ;;  %p601_p4 = scmp.lt.u32.totalorder %s593_s18, %s833_s3 }
 0x1b0   : > { %p595_p2 = pnand %p594_p9, %p766_p12 }
 0x1b1   : > { %p600_p1 = por %p599_p11, %p598_p0 }
 0x1b2   : > { %p596_p5 = pneg %p595_p2 }
 0x1b3   : > { %p602_p6 = por %p601_p4, %p600_p1 }
 0x1b5   : > { %p603_p8 = pnand %p602_p6, %p596_p5 }
 0x1b7   : > { %606 = shalt.err (!%p603_p8)
}
 0x1b8   : > { %456 = dma.vmem_to_hbm [thread:$0]  (%p766_p12), %s828_s22, 128, %s833_s3, %s306_s4   ;;  %v449_v23 = vpop.f32.mrb[3].mxu0 }
 0x1b9 PF: > { %s331_s29 = sand.u32 1, %s637_s9   ;;  %p892_p10 = scmp.ne.s32.totalorder %s882_s16, 0 }
 0x1ba   : > { %p893_p13 = scmp.ge.s32.totalorder %s649_s12, 2  ;;  %s332_s17 = scalar_lea.sflag [#allocation4], %s331_s29 }
 0x1bc   : > { %p467_p3 = pnand %p893_p13, %p892_p10 }
 0x1be   : > { %632 = dma.done.wait (!%p467_p3), %s332_s17, 128  }
 0x1bf   : > { %634 = vsyncadd (!%p467_p3), %s332_s17, 4294967168  ;;  %p16_p7 = scmp.ge.s32.totalorder %s731_s21, 4   ;;  %s894_s9 = smov %s641_s10 }
 0x1c0   : > { %s895_s10 = smov %s645_s11  ;;  %s896_s11 = smov %s762_s8 }
 0x1c1   : > { %s897_s12 = smov %s731_s21  ;;  %18 = sbr.rel (!%p16_p7) target bundleno = 6 (0x6), region = 77 }
 0x1c8   :  { %337 = vsyncpa [#allocation3], 1 }
 0x1c9   :  { %339 = vsyncpa [#allocation3 + $0x1], 1 }
 0x1ca   :  { %340 = vsyncpa [#allocation6], 1 }
 0x1cb   :  { %341 = vsyncpa [#allocation4], 1 }
 0x1cc   :  { %343 = vsyncpa [#allocation4 + $0x1], 1 }

</bundles_post_ra>
